<compile_context>
chip_gen: v7x
topology: tpu7x:2x2x1
jax: 0.10.0
libtpu: 0.0.40
codegen_flags: <defaults>
</compile_context>

<pallas_src>
import functools
import math

import jax
import jax.numpy as jnp
from jax.experimental import pallas as pl
from jax.experimental.pallas import tpu as pltpu


def _smoothness_kernel(flow_ref, out_ref, dx_carry_ref, x1_carry_ref, *, W):
    """One (NB, C, THW) tile: accumulate per-image sum(grad**2) into out_ref."""
    t = pl.program_id(1)
    nt = pl.num_programs(1)

    @pl.when(t == 0)
    def _():
        out_ref[...] = jnp.zeros_like(out_ref)

    x = flow_ref[...].astype(jnp.float32)      # (NB, 2, THW)
    x0 = x[:, 0, :]                            # flow-x channel, (NB, THW)
    x1 = x[:, 1, :]                            # flow-y channel, (NB, THW)
    NB, THW = x0.shape

    k = jax.lax.broadcasted_iota(jnp.int32, (NB, THW), 1)

    # d/dx: x0[i, j+1] - x0[i, j]; zero past the right image edge.
    right_ok = (k % W) < (W - 1)
    x0_right = jnp.where(right_ok, pltpu.roll(x0, THW - 1, 1), 0.0)
    dx = x0_right - x0                         # valid everywhere in the tile

    # d/dy for every row of this tile except its last one (whose lower
    # neighbour lives in the next tile, or is the zero-padding row).
    interior = k < (THW - W)
    x1_down = pltpu.roll(x1, THW - W, 1)       # x1[i+1, j]; garbage on last row (masked)
    grad_main = jnp.where(interior, dx + (x1_down - x1), 0.0)
    out_ref[...] += jnp.sum(grad_main * grad_main, axis=1, keepdims=True)

    # Finish the PREVIOUS tile's deferred last row using this tile's first row.
    @pl.when(t > 0)
    def _():
        g = dx_carry_ref[...] + (x1[:, :W] - x1_carry_ref[...])
        out_ref[...] += jnp.sum(g * g, axis=1, keepdims=True)

    # Stash this tile's last row (dx and x1) for the next step.
    dx_carry_ref[...] = dx[:, THW - W:]
    x1_carry_ref[...] = x1[:, THW - W:]

    # Last tile: its last row is the image's bottom row (lower neighbour = 0).
    @pl.when(t == nt - 1)
    def _():
        g = dx[:, THW - W:] - x1[:, THW - W:]
        out_ref[...] += jnp.sum(g * g, axis=1, keepdims=True)


def _pick_blocking(N, C, HW, W, itemsize, target_block_bytes):
    """Choose (NB images per step, THW flattened pixels per step)."""
    bytes_per_image = C * HW * itemsize
    if bytes_per_image <= target_block_bytes:
        thw = HW                                     # whole image per step
    else:
        # Row-aligned (multiple of W) and lane-aligned (multiple of 128) tile
        # that divides H*W and fits the byte budget (NB will be 1).
        g = (W * 128) // math.gcd(W, 128)
        max_elems = max(g, target_block_bytes // (C * itemsize))
        thw, m = None, g
        while m <= min(HW, max_elems):
            if HW % m == 0:
                thw = m
            m += g
        if thw is None:
            # TODO(synk): no clean row/lane-aligned divisor of H*W; fall back
            # to whole-image blocks and rely on vmem_limit_bytes (may not fit
            # v7x's 64 MiB VMEM for very large images).
            thw = HW
    nb = int(max(1, min(N, target_block_bytes // (C * thw * itemsize))))
    return nb, thw


def smoothness_loss(flow, *, target_block_bytes=2 * 1024 * 1024):
    """flow: [N, 2, H, W] (any float dtype) -> scalar loss (float32)."""
    N, C, H, W = flow.shape
    assert C == 2, "SmoothnessLoss expects 2-channel flow (NCHW)"
    HW = H * W
    itemsize = jnp.dtype(flow.dtype).itemsize

    NB, THW = _pick_blocking(N, C, HW, W, itemsize, target_block_bytes)
    n_blocks = pl.cdiv(N, NB)
    nt = HW // THW

    # Lane-dense view: last dim is H*W (free reshape, no data movement).
    flow_flat = flow.reshape(N, C, HW)

    compiler_kwargs = dict(dimension_semantics=("parallel", "arbitrary"))
    block_bytes = NB * C * THW * itemsize
    if 2 * block_bytes > 12 * 1024 * 1024:
        # Whole-image fallback for big images: raise the scoped VMEM limit
        # above the 16/32 MiB defaults (128 MiB physical on v5e/v6e).
        compiler_kwargs["vmem_limit_bytes"] = int(
            min(2 * block_bytes + (4 << 20), 100 * 1024 * 1024))

    per_image_sumsq = pl.pallas_call(
        functools.partial(_smoothness_kernel, W=W),
        out_shape=jax.ShapeDtypeStruct((N, 1), jnp.float32),
        grid=(n_blocks, nt),
        in_specs=[pl.BlockSpec((NB, C, THW), lambda n, t: (n, 0, t))],
        out_specs=pl.BlockSpec((NB, 1), lambda n, t: (n, 0)),
        scratch_shapes=[pltpu.VMEM((NB, W), jnp.float32),   # dx carry (last row)
                        pltpu.VMEM((NB, W), jnp.float32)],  # x1 carry (last row)
        compiler_params=pltpu.CompilerParams(**compiler_kwargs),
    )(flow_flat)

    # Tiny finishing work stays in XLA: per-image norm, then sum over batch.
    return jnp.sum(jnp.sqrt(per_image_sumsq[:, 0]))


def _reference_loss(flow):
    """Pure-JAX reference matching conv2d(padding='same') + matrix_norm().sum()."""
    flow = flow.astype(jnp.float32)
    x0 = flow[:, 0]
    x1 = flow[:, 1]
    x0r = jnp.pad(x0, ((0, 0), (0, 0), (0, 1)))[:, :, 1:]   # x0[:, :, j+1]
    x1d = jnp.pad(x1, ((0, 0), (0, 1), (0, 0)))[:, 1:, :]   # x1[:, i+1, :]
    grad = (x0r - x0) + (x1d - x1)
    return jnp.sum(jnp.sqrt(jnp.sum(grad * grad, axis=(1, 2))))


if __name__ == "__main__":
    key = jax.random.PRNGKey(0)
    flow = jax.random.normal(key, (2, 2, 16, 16), dtype=jnp.float32)
    ref = _reference_loss(flow)

    # Default path: whole image per step, NB = full batch, single HW tile.
    loss = jax.block_until_ready(jax.jit(smoothness_loss)(flow))
    assert jnp.allclose(loss, ref, rtol=1e-5, atol=1e-5), (loss, ref)

    # Force the HW-tiled reduction + sub-batched path (NB=1, two 128-lane HW
    # tiles) to exercise the accumulator and the d/dy halo-carry logic.
    tiled_fn = jax.jit(functools.partial(smoothness_loss, target_block_bytes=1024))
    loss_tiled = jax.block_until_ready(tiled_fn(flow))
    assert jnp.allclose(loss_tiled, ref, rtol=1e-5, atol=1e-5), (loss_tiled, ref)

    # Odd batch size, H*W exactly one lane width.
    flow2 = jax.random.normal(jax.random.PRNGKey(1), (3, 2, 8, 16), dtype=jnp.float32)
    loss2 = jax.block_until_ready(jax.jit(smoothness_loss)(flow2))
    assert jnp.allclose(loss2, _reference_loss(flow2), rtol=1e-5, atol=1e-5)

    print("KERNEL_OK")
</pallas_src>

<mosaic_0001>
module attributes {stable_mosaic.version = 11 : i64} {
  func.func @_smoothness_kernel(%arg0: i32, %arg1: i32, %arg2: memref<2x2x256xf32, #tpu.memory_space<vmem>>, %arg3: memref<2x1xf32, #tpu.memory_space<vmem>>, %arg4: memref<2x16xf32, #tpu.memory_space<vmem>>, %arg5: memref<2x16xf32, #tpu.memory_space<vmem>>) attributes {dimension_semantics = [#tpu.dimension_semantics<parallel>, #tpu.dimension_semantics<arbitrary>], iteration_bounds = array<i64: 1, 1>, scalar_prefetch = 0 : i64, scratch_operands = 2 : i64, tpu.core_type = #tpu.core_type<tc>, window_params = [{transform_indices = @transform_0, window_bounds = array<i64: 2, 2, 256>}, {transform_indices = @transform_1, window_bounds = array<i64: 2, 1>}]} {
    %c0_i32 = arith.constant 0 : i32
    %0 = arith.cmpi eq, %arg1, %c0_i32 : i32
    %1 = arith.extui %0 : i1 to i32
    %c0_i32_0 = arith.constant 0 : i32
    %2 = arith.cmpi ne, %1, %c0_i32_0 : i32
    scf.if %2 {
      %cst_22 = arith.constant 0.000000e+00 : f32
      %54 = vector.broadcast %cst_22 : f32 to vector<2x1xf32>
      %c0_23 = arith.constant 0 : index
      %c0_24 = arith.constant 0 : index
      %55 = vector.load %arg3[%c0_23, %c0_24] : memref<2x1xf32, #tpu.memory_space<vmem>>, vector<2x1xf32>
      tpu.vector_store %arg3[%c0_23, %c0_24], %54 {strides = array<i32>} : memref<2x1xf32, #tpu.memory_space<vmem>>, vector<2x1xf32>,
    } else {
    }
    %c0 = arith.constant 0 : index
    %c0_1 = arith.constant 0 : index
    %c0_2 = arith.constant 0 : index
    %3 = vector.load %arg2[%c0, %c0_1, %c0_2] : memref<2x2x256xf32, #tpu.memory_space<vmem>>, vector<2x2x256xf32>
    %4 = vector.extract_strided_slice %3 {offsets = [0, 0, 0], sizes = [2, 1, 256], strides = [1, 1, 1]} : vector<2x2x256xf32> to vector<2x1x256xf32>
    %5 = vector.shape_cast %4 : vector<2x1x256xf32> to vector<2x256xf32>
    %6 = vector.extract_strided_slice %3 {offsets = [0, 1, 0], sizes = [2, 1, 256], strides = [1, 1, 1]} : vector<2x2x256xf32> to vector<2x1x256xf32>
    %7 = vector.shape_cast %6 : vector<2x1x256xf32> to vector<2x256xf32>
    %8 = tpu.iota {dimensions = array<i32: 1>} : vector<2x256xi32>
    %c16_i32 = arith.constant 16 : i32
    %c0_i32_3 = arith.constant 0 : i32
    %9 = arith.cmpi eq, %c16_i32, %c0_i32_3 : i32
    %c1_i32 = arith.constant 1 : i32
    %10 = arith.select %9, %c1_i32, %c16_i32 : i32
    %11 = vector.broadcast %10 : i32 to vector<2x256xi32>
    %12 = arith.remsi %8, %11 : vector<2x256xi32>
    %c0_i32_4 = arith.constant 0 : i32
    %13 = vector.broadcast %c0_i32_4 : i32 to vector<2x256xi32>
    %14 = arith.cmpi ne, %12, %13 : vector<2x256xi32>
    %c0_i32_5 = arith.constant 0 : i32
    %15 = vector.broadcast %c0_i32_5 : i32 to vector<2x256xi32>
    %16 = arith.cmpi slt, %12, %15 : vector<2x256xi32>
    %c0_i32_6 = arith.constant 0 : i32
    %17 = arith.cmpi slt, %10, %c0_i32_6 : i32
    %18 = vector.broadcast %17 : i1 to vector<2x256xi1>
    %19 = vector.broadcast %18 : vector<2x256xi1> to vector<2x256xi1>
    %20 = arith.xori %16, %19 : vector<2x256xi1>
    %21 = arith.andi %20, %14 : vector<2x256xi1>
    %22 = vector.broadcast %10 : i32 to vector<2x256xi32>
    %23 = arith.addi %12, %22 : vector<2x256xi32>
    %24 = arith.select %21, %23, %12 : vector<2x256xi1>, vector<2x256xi32>
    %c15_i32 = arith.constant 15 : i32
    %25 = vector.broadcast %c15_i32 : i32 to vector<2x256xi32>
    %26 = arith.cmpi slt, %24, %25 : vector<2x256xi32>
    %c255_i32 = arith.constant 255 : i32
    %27 = tpu.dynamic_rotate %5 by %c255_i32 dim 1 : vector<2x256xf32>, i32 -> vector<2x256xf32>
    %cst = arith.constant 0.000000e+00 : f32
    %28 = vector.broadcast %cst : f32 to vector<2x256xf32>
    %29 = arith.select %26, %27, %28 : vector<2x256xi1>, vector<2x256xf32>
    %30 = arith.subf %29, %5 : vector<2x256xf32>
    %c240_i32 = arith.constant 240 : i32
    %31 = vector.broadcast %c240_i32 : i32 to vector<2x256xi32>
    %32 = arith.cmpi slt, %8, %31 : vector<2x256xi32>
    %c240_i32_7 = arith.constant 240 : i32
    %33 = tpu.dynamic_rotate %7 by %c240_i32_7 dim 1 : vector<2x256xf32>, i32 -> vector<2x256xf32>
    %34 = arith.subf %33, %7 : vector<2x256xf32>
    %35 = arith.addf %30, %34 : vector<2x256xf32>
    %cst_8 = arith.constant 0.000000e+00 : f32
    %36 = vector.broadcast %cst_8 : f32 to vector<2x256xf32>
    %37 = arith.select %32, %35, %36 : vector<2x256xi1>, vector<2x256xf32>
    %c0_9 = arith.constant 0 : index
    %c0_10 = arith.constant 0 : index
    %38 = vector.load %arg3[%c0_9, %c0_10] : memref<2x1xf32, #tpu.memory_space<vmem>>, vector<2x1xf32>
    %39 = arith.mulf %37, %37 : vector<2x256xf32>
    %cst_11 = arith.constant dense<0.000000e+00> : vector<2xf32>
    %40 = vector.multi_reduction <add>, %39, %cst_11 [1] : vector<2x256xf32> to vector<2xf32>
    %41 = vector.shape_cast %40 : vector<2xf32> to vector<2x1xf32>
    %42 = arith.addf %38, %41 : vector<2x1xf32>
    %c0_12 = arith.constant 0 : index
    %c0_13 = arith.constant 0 : index
    %43 = vector.load %arg3[%c0_12, %c0_13] : memref<2x1xf32, #tpu.memory_space<vmem>>, vector<2x1xf32>
    tpu.vector_store %arg3[%c0_12, %c0_13], %42 {strides = array<i32>} : memref<2x1xf32, #tpu.memory_space<vmem>>, vector<2x1xf32>,
    %c0_i32_14 = arith.constant 0 : i32
    %44 = arith.cmpi sgt, %arg1, %c0_i32_14 : i32
    %45 = arith.extui %44 : i1 to i32
    %c0_i32_15 = arith.constant 0 : i32
    %46 = arith.cmpi ne, %45, %c0_i32_15 : i32
    scf.if %46 {
      %c0_22 = arith.constant 0 : index
      %c0_23 = arith.constant 0 : index
      %54 = vector.load %arg4[%c0_22, %c0_23] : memref<2x16xf32, #tpu.memory_space<vmem>>, vector<2x16xf32>
      %55 = vector.extract_strided_slice %7 {offsets = [0, 0], sizes = [2, 16], strides = [1, 1]} : vector<2x256xf32> to vector<2x16xf32>
      %c0_24 = arith.constant 0 : index
      %c0_25 = arith.constant 0 : index
      %56 = vector.load %arg5[%c0_24, %c0_25] : memref<2x16xf32, #tpu.memory_space<vmem>>, vector<2x16xf32>
      %57 = arith.subf %55, %56 : vector<2x16xf32>
      %58 = arith.addf %54, %57 : vector<2x16xf32>
      %c0_26 = arith.constant 0 : index
      %c0_27 = arith.constant 0 : index
      %59 = vector.load %arg3[%c0_26, %c0_27] : memref<2x1xf32, #tpu.memory_space<vmem>>, vector<2x1xf32>
      %60 = arith.mulf %58, %58 : vector<2x16xf32>
      %cst_28 = arith.constant dense<0.000000e+00> : vector<2xf32>
      %61 = vector.multi_reduction <add>, %60, %cst_28 [1] : vector<2x16xf32> to vector<2xf32>
      %62 = vector.shape_cast %61 : vector<2xf32> to vector<2x1xf32>
      %63 = arith.addf %59, %62 : vector<2x1xf32>
      %c0_29 = arith.constant 0 : index
      %c0_30 = arith.constant 0 : index
      %64 = vector.load %arg3[%c0_29, %c0_30] : memref<2x1xf32, #tpu.memory_space<vmem>>, vector<2x1xf32>
      tpu.vector_store %arg3[%c0_29, %c0_30], %63 {strides = array<i32>} : memref<2x1xf32, #tpu.memory_space<vmem>>, vector<2x1xf32>,
    } else {
    }
    %47 = vector.extract_strided_slice %30 {offsets = [0, 240], sizes = [2, 16], strides = [1, 1]} : vector<2x256xf32> to vector<2x16xf32>
    %c0_16 = arith.constant 0 : index
    %c0_17 = arith.constant 0 : index
    %48 = vector.load %arg4[%c0_16, %c0_17] : memref<2x16xf32, #tpu.memory_space<vmem>>, vector<2x16xf32>
    tpu.vector_store %arg4[%c0_16, %c0_17], %47 {strides = array<i32>} : memref<2x16xf32, #tpu.memory_space<vmem>>, vector<2x16xf32>,
    %49 = vector.extract_strided_slice %7 {offsets = [0, 240], sizes = [2, 16], strides = [1, 1]} : vector<2x256xf32> to vector<2x16xf32>
    %c0_18 = arith.constant 0 : index
    %c0_19 = arith.constant 0 : index
    %50 = vector.load %arg5[%c0_18, %c0_19] : memref<2x16xf32, #tpu.memory_space<vmem>>, vector<2x16xf32>
    tpu.vector_store %arg5[%c0_18, %c0_19], %49 {strides = array<i32>} : memref<2x16xf32, #tpu.memory_space<vmem>>, vector<2x16xf32>,
    %c0_i32_20 = arith.constant 0 : i32
    %51 = arith.cmpi eq, %arg1, %c0_i32_20 : i32
    %52 = arith.extui %51 : i1 to i32
    %c0_i32_21 = arith.constant 0 : i32
    %53 = arith.cmpi ne, %52, %c0_i32_21 : i32
    scf.if %53 {
      %54 = vector.extract_strided_slice %30 {offsets = [0, 240], sizes = [2, 16], strides = [1, 1]} : vector<2x256xf32> to vector<2x16xf32>
      %55 = vector.extract_strided_slice %7 {offsets = [0, 240], sizes = [2, 16], strides = [1, 1]} : vector<2x256xf32> to vector<2x16xf32>
      %56 = arith.subf %54, %55 : vector<2x16xf32>
      %c0_22 = arith.constant 0 : index
      %c0_23 = arith.constant 0 : index
      %57 = vector.load %arg3[%c0_22, %c0_23] : memref<2x1xf32, #tpu.memory_space<vmem>>, vector<2x1xf32>
      %58 = arith.mulf %56, %56 : vector<2x16xf32>
      %cst_24 = arith.constant dense<0.000000e+00> : vector<2xf32>
      %59 = vector.multi_reduction <add>, %58, %cst_24 [1] : vector<2x16xf32> to vector<2xf32>
      %60 = vector.shape_cast %59 : vector<2xf32> to vector<2x1xf32>
      %61 = arith.addf %57, %60 : vector<2x1xf32>
      %c0_25 = arith.constant 0 : index
      %c0_26 = arith.constant 0 : index
      %62 = vector.load %arg3[%c0_25, %c0_26] : memref<2x1xf32, #tpu.memory_space<vmem>>, vector<2x1xf32>
      tpu.vector_store %arg3[%c0_25, %c0_26], %61 {strides = array<i32>} : memref<2x1xf32, #tpu.memory_space<vmem>>, vector<2x1xf32>,
    } else {
    }
    return
  }
  func.func @transform_0(%arg0: i32, %arg1: i32) -> (i32, i32, i32) {
    %c0_i32 = arith.constant 0 : i32
    %c0_i32_0 = arith.constant 0 : i32
    return %arg0, %c0_i32, %arg1 : i32, i32, i32
  }
  func.func @transform_1(%arg0: i32, %arg1: i32) -> (i32, i32) {
    %c0_i32 = arith.constant 0 : i32
    %c0_i32_0 = arith.constant 0 : i32
    return %arg0, %c0_i32 : i32, i32
  }
}

</mosaic_0001>

<bundles_post_ra>
// kernel: smoothness_loss.1
= control target key start
LH: loop header
LB: loop body
LE: loop exit
PB: predicated region body
PF: predicated region fallthrough
CT: control target
= control target key end

     0   :  { %v16_v0 = vlaneseq  ;;  %vm63_vm0 = vcmask 1041409   ;;  %s203_s10 = smov 127   ;;  %vm117_vm6 = vcmask 1041408   ;;  %s205_s11 = smov 16   ;;  %vm12_vm7 = vcmask 1024   ;;  %s245_s0 = inlined_call_operand.vmem [shape: f32[2,2,256], index: 0, kind: input, shape index: {}]   ;;  %s246_s1 = inlined_call_operand.vmem [shape: f32[2,1], index: 1, kind: output, shape index: {}]  }
   0x1   :  { %v14_v2 = vld [vmem:[%s245_s0] sm:$0xf]  ;;  %v15_v3 = vld [vmem:[%s245_s0 + $0x4] sm:$0xf]  ;;  %s204_s0 = smov 112   ;;  %v206_v48 = vmov 0.0  }
   0x2   :  { %v48_v1 = vshrl.u32 %v16_v0, 7  ;;  %v17_v20 = vand.u32 127, %v16_v0  ;;  %13 = vst.msk [vmem:[%s246_s1] sm:$0x3] %vm12_vm7, %v206_v48  ;;  %vm172_vm8 = vcmask 1042434   ;;  %vm170_vm9 = vcmask 123904  }
   0x4   :  { %v49_v4 = vsub.s32 0, %v48_v1  ;;  %v83_v5 = vsub.s32 1, %v48_v1  ;;  %v53_v6 = vsub.s32 2, %v48_v1  ;;  %v87_v7 = vsub.s32 3, %v48_v1 }
   0x5   :  { %v18_v21 = vadd.s32 128, %v17_v20  ;;  %v23_v22 = vand.u32 15, %v17_v20  ;;  %vm72_vm1 = vcmp.lt.s32.totalorder %v17_v20, 127  ;;  %vm105_vm2 = vcmp.lt.s32.totalorder %v17_v20, 112 }
   0x6   :  { %v50_v8 = vrot.slane %v14_v2, %v49_v4  ;;  %v58_v9 = vrot.slane %v15_v3, %v49_v4  ;;  %v84_v10 = vrot.slane %v14_v2, %v83_v5  ;;  %v92_v11 = vrot.slane %v15_v3, %v83_v5 }
   0x7   :  { %v54_v12 = vrot.slane %v14_v2, %v53_v6  ;;  %v62_v13 = vrot.slane %v15_v3, %v53_v6  ;;  %v88_v14 = vrot.slane %v14_v2, %v87_v7  ;;  %v96_v15 = vrot.slane %v15_v3, %v87_v7 }
   0x8   :  { %v64_v16 = vsel %vm63_vm0, %v58_v9, %v50_v8  ;;  %v97_v17 = vsel %vm63_vm0, %v92_v11, %v84_v10  ;;  %v30_v23 = vand.u32 15, %v18_v21  ;;  %vm43_vm3 = vcmp.lt.s32.totalorder %v23_v22, 15 }
   0x9   :  { %68 = vrot.lane.b32.xlu0 %v64_v16, %s203_s10  ;;  %101 = vrot.lane.b32.xlu1 %v97_v17, %s204_s0  ;;  %v65_v18 = vsel %vm63_vm0, %v62_v13, %v54_v12  ;;  %v98_v19 = vsel %vm63_vm0, %v96_v15, %v88_v14  ;;  %vm80_vm5 = vcmp.lt.s32.totalorder %v18_v21, 240  ;;  %v173_v49 = vsel %vm172_vm8, %v96_v15, %v88_v14  ;;  %v114_v52 = vld [vmem:[%s246_s1] sm:$0x3] }
   0xa   :  { %vm44_vm4 = vcmp.lt.s32.totalorder %v30_v23, 15 }
   0xd   :  { %70 = vrot.lane.b32.xlu0 %v65_v18, %s203_s10  ;;  %103 = vrot.lane.b32.xlu1 %v98_v19, %s204_s0 }
  0x7b   :  { %v69_v24 = vpop.permute.xlu0 %68  ;;  %v102_v25 = vpop.permute.xlu1 %101 }
  0x7f   :  { %v71_v26 = vpop.permute.xlu0 %70  ;;  %v104_v27 = vpop.permute.xlu1 %103 }
  0x80   :  { %v73_v28 = vsel %vm72_vm1, %v69_v24, %v71_v26  ;;  %v74_v29 = vsel %vm72_vm1, %v71_v26, %v69_v24  ;;  %v106_v30 = vsel %vm105_vm2, %v102_v25, %v104_v27  ;;  %v107_v31 = vsel %vm105_vm2, %v104_v27, %v102_v25 }
  0x81   :  { %v75_v32 = vsel %vm43_vm3, %v73_v28, 0.0  ;;  %v76_v33 = vsel %vm44_vm4, %v74_v29, 0.0  ;;  %v108_v34 = vsub.f32 %v106_v30, %v97_v17  ;;  %v109_v35 = vsub.f32 %v107_v31, %v98_v19 }
  0x82   :  { %v77_v36 = vsub.f32 %v75_v32, %v64_v16  ;;  %v78_v37 = vsub.f32 %v76_v33, %v65_v18 }
  0x84   :  { %v110_v38 = vadd.f32 %v108_v34, %v77_v36  ;;  %v111_v39 = vadd.f32 %v109_v35, %v78_v37  ;;  %v182_v40 = vsub.f32 %v78_v37, %v98_v19 }
  0x86   :  { %v184_v41 = vmul.f32 %v182_v40, %v182_v40  ;;  %v113_v42 = vsel %vm80_vm5, %v111_v39, 0.0  ;;  %v115_v43 = vmul.f32 %v110_v38, %v110_v38 }
  0x87   :  { %v116_v44 = vmul.f32 %v113_v42, %v113_v42 }
  0x88   :  { %186 = vrot.lane.b32.xlu0 %v184_v41, %s205_s11  ;;  %v118_v45 = vsel %vm117_vm6, %v115_v43, 0.0 }
  0x89   :  { %v119_v46 = vsel %vm117_vm6, %v116_v44, 0.0 }
  0x8a   :  { %v120_v47 = vadd.f32 %v119_v46, %v118_v45 }
  0x8c   :  { %121 = vadd.xlane.f32.xlu1 %v120_v47 }
  0x9d   :  { %174 = vrot.lane.b32.xlu1 %v173_v49, %s205_s11 }
  0xfa   :  { %v187_v50 = vpop.permute.xlu0 %186 }
  0xfb   :  { %v189_v51 = vsel %vm170_vm9, %v187_v50, 0.0 }
  0xfc   :  { %190 = vadd.xlane.f32.xlu0 %v189_v51 }
 0x112   :  { %167 = vrot.lane.b32.xlu0 %v78_v37, %s205_s11 }
 0x119   :  { %v122_v53 = vpop.xlane.xlu1 %121 }
 0x11a   :  { %v123_v54 = vadd.f32 %v122_v53, %v114_v52 }
 0x11c   :  { %125 = vst.msk [vmem:[%s246_s1] sm:$0x3] %vm12_vm7, %v123_v54 }
 0x11d   :  { %v175_v55 = vpop.permute.xlu1 %174 }
 0x123   :  { %v183_v57 = vld [vmem:[%s246_s1] sm:$0x3] }
 0x189   :  { %v191_v56 = vpop.xlane.xlu0 %190 }
 0x18a   :  { %v192_v58 = vadd.f32 %v191_v56, %v183_v57 }
 0x18c   :  { %193 = vst.msk [vmem:[%s246_s1] sm:$0x3] %vm12_vm7, %v192_v58 }
 0x18d   :  { %v168_v59 = vpop.permute.xlu0 %167 }

</bundles_post_ra>
